<compile_context>
chip_gen: v7x
topology: tpu7x:2x2x1
jax: 0.10.0
libtpu: 0.0.40
codegen_flags: <defaults>
</compile_context>

<pallas_src>
import functools

import jax
import jax.numpy as jnp
from jax.experimental import pallas as pl
from jax.experimental.pallas import tpu as pltpu


def _largest_divisor_tile(total, quantum, cap):
    """Largest multiple of `quantum` dividing `total`, at most `cap`.

    Falls back to `total` (full extent) when `total` is not a multiple of
    `quantum` -- a full-extent block is always legal for Mosaic.
    """
    if total <= 0 or total % quantum != 0:
        return total
    cap = max(quantum, (min(cap, total) // quantum) * quantum)
    t = cap
    while total % t != 0:
        t -= quantum
    return t


def _feature_att_kernel(w1_ref, scale_ref, shift_ref, w2_ref, b2_ref,
                        feat_ref, cv_ref, out_ref, att_ref, *, negative_slope):
    # w1_ref   : (Ch, Cf)      first 1x1 conv weight (BasicConv conv, bias=False)
    # scale_ref: (Ch, 1)       folded BatchNorm scale  (gamma / sqrt(var + eps))
    # shift_ref: (Ch, 1)       folded BatchNorm shift  (beta - mean * scale)
    # w2_ref   : (Ccv, Ch)     second 1x1 conv weight
    # b2_ref   : (Ccv, 1)      second 1x1 conv bias
    # feat_ref : (Cf, TS)      feature block for this (n, spatial tile)
    # cv_ref   : (Ccv, TD, TS) cost-volume block
    # out_ref  : (Ccv, TD, TS)
    # att_ref  : (Ccv, TS)     VMEM scratch, persists across the D grid axis
    d = pl.program_id(2)

    @pl.when(d == 0)
    def _():
        # Both 1x1 convs are channel matmuls on the MXU.
        f = feat_ref[...].astype(jnp.float32)                     # (Cf, TS)
        h = jnp.dot(w1_ref[...], f,
                    preferred_element_type=jnp.float32,
                    precision=jax.lax.Precision.HIGHEST)          # (Ch, TS)
        h = h * scale_ref[...] + shift_ref[...]                   # folded BN (eval)
        h = jnp.where(h > 0, h, negative_slope * h)               # LeakyReLU(0.01)
        a = jnp.dot(w2_ref[...], h,
                    preferred_element_type=jnp.float32,
                    precision=jax.lax.Precision.HIGHEST) + b2_ref[...]
        att_ref[...] = jax.nn.sigmoid(a)                          # (Ccv, TS)

    # Broadcast-multiply the attention over the disparity axis, one cost-volume
    # channel at a time: major-axis indexing is free, (1,TS)*(TD,TS) is a cheap
    # sublane broadcast, and the stores stay lane-dense full tiles.
    n_cv = out_ref.shape[0]
    for c in range(n_cv):
        out_ref[c] = (att_ref[pl.ds(c, 1), :] *
                      cv_ref[c].astype(jnp.float32)).astype(out_ref.dtype)


@functools.partial(jax.jit, static_argnames=("eps", "negative_slope"))
def feature_att(cv, feat, w1, bn_gamma, bn_beta, bn_mean, bn_var, w2, b2,
                *, eps=1e-5, negative_slope=0.01):
    """cv: (N, Ccv, D, H, W); feat: (N, Cf, H, W) -> sigmoid(att(feat))[:, :, None] * cv."""
    N, Ccv, D, H, W = cv.shape
    _, Cf, _, _ = feat.shape
    Ch = w1.shape[0]
    S = H * W
    itemsize = jnp.dtype(cv.dtype).itemsize

    # Spatial tile: as large as divides S, multiple of 128, up to 4096 lanes.
    TS = _largest_divisor_tile(S, 128, 4096)
    # Disparity tile: fill a ~32 MiB budget for the double-buffered cv in/out
    # blocks (4 blocks of Ccv*TD*TS live at once).
    blk_budget = 32 * 1024 * 1024
    td_cap = max(8, blk_budget // max(1, 4 * Ccv * TS * itemsize))
    TD = _largest_divisor_tile(D, 8, td_cap)

    # Free reshapes only (contiguous trailing-dim merge): no extra HBM pass.
    cv_flat = cv.reshape(N, Ccv, D, S)
    feat_flat = feat.reshape(N, Cf, S)

    # Fold BatchNorm (eval mode) into a per-channel scale/shift.
    inv_std = 1.0 / jnp.sqrt(bn_var.astype(jnp.float32) + eps)
    scale = (bn_gamma.astype(jnp.float32) * inv_std).reshape(Ch, 1)
    shift = (bn_beta.astype(jnp.float32)
             - bn_mean.astype(jnp.float32) * bn_gamma.astype(jnp.float32) * inv_std
             ).reshape(Ch, 1)
    w1f = w1.astype(jnp.float32)
    w2f = w2.astype(jnp.float32)
    b2f = b2.astype(jnp.float32).reshape(Ccv, 1)

    # Explicit VMEM accounting: double-buffered cv in/out + feat blocks,
    # attention scratch and parameters, plus headroom; capped well below
    # v7x's 64 MiB physical VMEM.
    block_bytes = (4 * Ccv * TD * TS * itemsize          # cv in + out, x2 buffers
                   + 2 * Cf * TS * itemsize              # feat block,   x2 buffers
                   + 4 * Ccv * TS                        # att scratch (f32)
                   + 4 * 2 * (Ch * Cf + Ccv * Ch + 2 * Ch + Ccv))
    vmem_limit = int(min(max(block_bytes + (2 << 20), 16 * 1024 * 1024),
                         50 * 1024 * 1024))

    kernel = functools.partial(_feature_att_kernel,
                               negative_slope=negative_slope)

    out = pl.pallas_call(
        kernel,
        out_shape=jax.ShapeDtypeStruct((N, Ccv, D, S), cv.dtype),
        grid_spec=pltpu.PrefetchScalarGridSpec(
            num_scalar_prefetch=0,
            grid=(N, S // TS, D // TD),
            in_specs=[
                # Small parameters: full-array VMEM blocks, fetched once.
                pl.BlockSpec((Ch, Cf), lambda n, s, d: (0, 0)),
                pl.BlockSpec((Ch, 1), lambda n, s, d: (0, 0)),
                pl.BlockSpec((Ch, 1), lambda n, s, d: (0, 0)),
                pl.BlockSpec((Ccv, Ch), lambda n, s, d: (0, 0)),
                pl.BlockSpec((Ccv, 1), lambda n, s, d: (0, 0)),
                # Feature block: index independent of d -> not re-DMA'd over D.
                pl.BlockSpec((None, Cf, TS), lambda n, s, d: (n, 0, s)),
                # Cost-volume block.
                pl.BlockSpec((None, Ccv, TD, TS), lambda n, s, d: (n, 0, d, s)),
            ],
            out_specs=pl.BlockSpec((None, Ccv, TD, TS),
                                   lambda n, s, d: (n, 0, d, s)),
            scratch_shapes=[pltpu.VMEM((Ccv, TS), jnp.float32)],
        ),
        compiler_params=pltpu.CompilerParams(
            dimension_semantics=("parallel", "parallel", "arbitrary"),
            vmem_limit_bytes=vmem_limit),
    )(w1f, scale, shift, w2f, b2f, feat_flat, cv_flat)

    return out.reshape(N, Ccv, D, H, W)


def _reference(cv, feat, w1, bn_gamma, bn_beta, bn_mean, bn_var, w2, b2,
               eps=1e-5, negative_slope=0.01):
    h = jnp.einsum('oc,nchw->nohw', w1, feat,
                   precision=jax.lax.Precision.HIGHEST)
    inv_std = bn_gamma / jnp.sqrt(bn_var + eps)
    h = (h * inv_std[None, :, None, None]
         + (bn_beta - bn_mean * inv_std)[None, :, None, None])
    h = jnp.where(h > 0, h, negative_slope * h)
    a = (jnp.einsum('oc,nchw->nohw', w2, h,
                    precision=jax.lax.Precision.HIGHEST)
         + b2[None, :, None, None])
    att = jax.nn.sigmoid(a)
    return att[:, :, None, :, :] * cv


if __name__ == "__main__":
    key = jax.random.PRNGKey(0)
    keys = jax.random.split(key, 9)

    # Small shapes consistent with the module: FeatureAtt(cv_chan=4, feat_chan=8)
    N, Cf, Ccv, D, H, W = 2, 8, 4, 8, 16, 16
    Ch = Cf // 2

    feat = jax.random.normal(keys[0], (N, Cf, H, W), dtype=jnp.float32)
    cv = jax.random.normal(keys[1], (N, Ccv, D, H, W), dtype=jnp.float32)

    w1 = jax.random.normal(keys[2], (Ch, Cf), dtype=jnp.float32) / (Cf ** 0.5)
    bn_gamma = jax.random.uniform(keys[3], (Ch,), jnp.float32, minval=0.5, maxval=1.5)
    bn_beta = 0.1 * jax.random.normal(keys[4], (Ch,), dtype=jnp.float32)
    bn_mean = 0.1 * jax.random.normal(keys[5], (Ch,), dtype=jnp.float32)
    bn_var = jax.random.uniform(keys[6], (Ch,), jnp.float32, minval=0.5, maxval=1.5)
    w2 = jax.random.normal(keys[7], (Ccv, Ch), dtype=jnp.float32) / (Ch ** 0.5)
    b2 = 0.1 * jax.random.normal(keys[8], (Ccv,), dtype=jnp.float32)

    out = feature_att(cv, feat, w1, bn_gamma, bn_beta, bn_mean, bn_var, w2, b2)
    out = jax.block_until_ready(out)

    ref = _reference(cv, feat, w1, bn_gamma, bn_beta, bn_mean, bn_var, w2, b2)
    assert out.shape == cv.shape
    max_err = float(jnp.max(jnp.abs(out - ref)))
    assert jnp.allclose(out, ref, atol=1e-4, rtol=1e-4), max_err

    print("KERNEL_OK")
</pallas_src>

<mosaic_0001>
module attributes {stable_mosaic.version = 11 : i64} {
  func.func @_feature_att_kernel(%arg0: i32, %arg1: i32, %arg2: i32, %arg3: memref<4x8xf32, #tpu.memory_space<vmem>>, %arg4: memref<4x1xf32, #tpu.memory_space<vmem>>, %arg5: memref<4x1xf32, #tpu.memory_space<vmem>>, %arg6: memref<4x4xf32, #tpu.memory_space<vmem>>, %arg7: memref<4x1xf32, #tpu.memory_space<vmem>>, %arg8: memref<1x8x256xf32, #tpu.memory_space<vmem>>, %arg9: memref<1x4x8x256xf32, #tpu.memory_space<vmem>>, %arg10: memref<1x4x8x256xf32, #tpu.memory_space<vmem>>, %arg11: memref<4x256xf32, #tpu.memory_space<vmem>>) attributes {dimension_semantics = [#tpu.dimension_semantics<parallel>, #tpu.dimension_semantics<parallel>, #tpu.dimension_semantics<arbitrary>], iteration_bounds = array<i64: 2, 1, 1>, scalar_prefetch = 0 : i64, scratch_operands = 1 : i64, tpu.core_type = #tpu.core_type<tc>, window_params = [{pipeline_mode = #tpu.pipeline_mode<synchronous>, transform_indices = @transform_0, window_bounds = array<i64: 4, 8>}, {pipeline_mode = #tpu.pipeline_mode<synchronous>, transform_indices = @transform_1, window_bounds = array<i64: 4, 1>}, {pipeline_mode = #tpu.pipeline_mode<synchronous>, transform_indices = @transform_2, window_bounds = array<i64: 4, 1>}, {pipeline_mode = #tpu.pipeline_mode<synchronous>, transform_indices = @transform_3, window_bounds = array<i64: 4, 4>}, {pipeline_mode = #tpu.pipeline_mode<synchronous>, transform_indices = @transform_4, window_bounds = array<i64: 4, 1>}, {transform_indices = @transform_5, window_bounds = array<i64: 1, 8, 256>}, {transform_indices = @transform_6, window_bounds = array<i64: 1, 4, 8, 256>}, {transform_indices = @transform_7, window_bounds = array<i64: 1, 4, 8, 256>}]} {
    %c0_i32 = arith.constant 0 : i32
    %0 = arith.cmpi eq, %arg2, %c0_i32 : i32
    %1 = arith.extui %0 : i1 to i32
    %c0_i32_0 = arith.constant 0 : i32
    %2 = arith.cmpi ne, %1, %c0_i32_0 : i32
    scf.if %2 {
      %c0_37 = arith.constant 0 : index
      %c0_38 = arith.constant 0 : index
      %c0_39 = arith.constant 0 : index
      %35 = vector.load %arg8[%c0_37, %c0_38, %c0_39] : memref<1x8x256xf32, #tpu.memory_space<vmem>>, vector<1x8x256xf32>
      %36 = vector.shape_cast %35 : vector<1x8x256xf32> to vector<8x256xf32>
      %c0_40 = arith.constant 0 : index
      %c0_41 = arith.constant 0 : index
      %37 = vector.load %arg3[%c0_40, %c0_41] : memref<4x8xf32, #tpu.memory_space<vmem>>, vector<4x8xf32>
      %cst = arith.constant dense<0.000000e+00> : vector<4x256xf32>
      %38 = tpu.matmul %37, %36, %cst {dimension_numbers = #tpu.dot_dimension_numbers<[1], [0], [0], [1], [0, 0, 1, 1], [], []>, precision = #tpu.contract_precision<fp32>} : vector<4x8xf32>, vector<8x256xf32>, vector<4x256xf32> -> vector<4x256xf32>
      %c0_42 = arith.constant 0 : index
      %c0_43 = arith.constant 0 : index
      %39 = vector.load %arg4[%c0_42, %c0_43] : memref<4x1xf32, #tpu.memory_space<vmem>>, vector<4x1xf32>
      %40 = vector.broadcast %39 : vector<4x1xf32> to vector<4x256xf32>
      %41 = arith.mulf %38, %40 : vector<4x256xf32>
      %c0_44 = arith.constant 0 : index
      %c0_45 = arith.constant 0 : index
      %42 = vector.load %arg5[%c0_44, %c0_45] : memref<4x1xf32, #tpu.memory_space<vmem>>, vector<4x1xf32>
      %43 = vector.broadcast %42 : vector<4x1xf32> to vector<4x256xf32>
      %44 = arith.addf %41, %43 : vector<4x256xf32>
      %cst_46 = arith.constant 0.000000e+00 : f32
      %45 = vector.broadcast %cst_46 : f32 to vector<4x256xf32>
      %46 = arith.cmpf ogt, %44, %45 : vector<4x256xf32>
      %cst_47 = arith.constant 0.00999999977 : f32
      %47 = vector.broadcast %cst_47 : f32 to vector<4x256xf32>
      %48 = arith.mulf %47, %44 : vector<4x256xf32>
      %49 = arith.select %46, %44, %48 : vector<4x256xi1>, vector<4x256xf32>
      %c0_48 = arith.constant 0 : index
      %c0_49 = arith.constant 0 : index
      %50 = vector.load %arg6[%c0_48, %c0_49] : memref<4x4xf32, #tpu.memory_space<vmem>>, vector<4x4xf32>
      %cst_50 = arith.constant dense<0.000000e+00> : vector<4x256xf32>
      %51 = tpu.matmul %50, %49, %cst_50 {dimension_numbers = #tpu.dot_dimension_numbers<[1], [0], [0], [1], [0, 0, 1, 1], [], []>, precision = #tpu.contract_precision<fp32>} : vector<4x4xf32>, vector<4x256xf32>, vector<4x256xf32> -> vector<4x256xf32>
      %c0_51 = arith.constant 0 : index
      %c0_52 = arith.constant 0 : index
      %52 = vector.load %arg7[%c0_51, %c0_52] : memref<4x1xf32, #tpu.memory_space<vmem>>, vector<4x1xf32>
      %53 = vector.broadcast %52 : vector<4x1xf32> to vector<4x256xf32>
      %54 = arith.addf %51, %53 : vector<4x256xf32>
      %55 = arith.negf %54 : vector<4x256xf32>
      %56 = math.exp %55 : vector<4x256xf32>
      %cst_53 = arith.constant 1.000000e+00 : f32
      %57 = vector.broadcast %cst_53 : f32 to vector<4x256xf32>
      %58 = arith.addf %57, %56 : vector<4x256xf32>
      %59 = arith.divf %57, %58 : vector<4x256xf32>
      %c0_54 = arith.constant 0 : index
      %c0_55 = arith.constant 0 : index
      %60 = vector.load %arg11[%c0_54, %c0_55] : memref<4x256xf32, #tpu.memory_space<vmem>>, vector<4x256xf32>
      tpu.vector_store %arg11[%c0_54, %c0_55], %59 {strides = array<i32>} : memref<4x256xf32, #tpu.memory_space<vmem>>, vector<4x256xf32>,
    } else {
    }
    %c0 = arith.constant 0 : index
    %c0_1 = arith.constant 0 : index
    %3 = vector.load %arg11[%c0, %c0_1] : memref<4x256xf32, #tpu.memory_space<vmem>>, vector<1x256xf32>
    %c0_2 = arith.constant 0 : index
    %c0_3 = arith.constant 0 : index
    %c0_4 = arith.constant 0 : index
    %c0_5 = arith.constant 0 : index
    %4 = vector.load %arg9[%c0_2, %c0_3, %c0_4, %c0_5] : memref<1x4x8x256xf32, #tpu.memory_space<vmem>>, vector<1x1x8x256xf32>
    %5 = vector.shape_cast %4 : vector<1x1x8x256xf32> to vector<8x256xf32>
    %6 = vector.broadcast %3 : vector<1x256xf32> to vector<8x256xf32>
    %7 = arith.mulf %6, %5 : vector<8x256xf32>
    %c0_6 = arith.constant 0 : index
    %c0_7 = arith.constant 0 : index
    %c0_8 = arith.constant 0 : index
    %c0_9 = arith.constant 0 : index
    %8 = vector.load %arg10[%c0_6, %c0_7, %c0_8, %c0_9] : memref<1x4x8x256xf32, #tpu.memory_space<vmem>>, vector<1x1x8x256xf32>
    %9 = vector.shape_cast %8 : vector<1x1x8x256xf32> to vector<8x256xf32>
    %10 = vector.shape_cast %7 : vector<8x256xf32> to vector<1x1x8x256xf32>
    tpu.vector_store %arg10[%c0_6, %c0_7, %c0_8, %c0_9], %10 {strides = array<i32>} : memref<1x4x8x256xf32, #tpu.memory_space<vmem>>, vector<1x1x8x256xf32>,
    %c1 = arith.constant 1 : index
    %c0_10 = arith.constant 0 : index
    %11 = vector.load %arg11[%c1, %c0_10] : memref<4x256xf32, #tpu.memory_space<vmem>>, vector<1x256xf32>
    %c0_11 = arith.constant 0 : index
    %c1_12 = arith.constant 1 : index
    %c0_13 = arith.constant 0 : index
    %c0_14 = arith.constant 0 : index
    %12 = vector.load %arg9[%c0_11, %c1_12, %c0_13, %c0_14] : memref<1x4x8x256xf32, #tpu.memory_space<vmem>>, vector<1x1x8x256xf32>
    %13 = vector.shape_cast %12 : vector<1x1x8x256xf32> to vector<8x256xf32>
    %14 = vector.broadcast %11 : vector<1x256xf32> to vector<8x256xf32>
    %15 = arith.mulf %14, %13 : vector<8x256xf32>
    %c0_15 = arith.constant 0 : index
    %c1_16 = arith.constant 1 : index
    %c0_17 = arith.constant 0 : index
    %c0_18 = arith.constant 0 : index
    %16 = vector.load %arg10[%c0_15, %c1_16, %c0_17, %c0_18] : memref<1x4x8x256xf32, #tpu.memory_space<vmem>>, vector<1x1x8x256xf32>
    %17 = vector.shape_cast %16 : vector<1x1x8x256xf32> to vector<8x256xf32>
    %18 = vector.shape_cast %15 : vector<8x256xf32> to vector<1x1x8x256xf32>
    tpu.vector_store %arg10[%c0_15, %c1_16, %c0_17, %c0_18], %18 {strides = array<i32>} : memref<1x4x8x256xf32, #tpu.memory_space<vmem>>, vector<1x1x8x256xf32>,
    %c2 = arith.constant 2 : index
    %c0_19 = arith.constant 0 : index
    %19 = vector.load %arg11[%c2, %c0_19] : memref<4x256xf32, #tpu.memory_space<vmem>>, vector<1x256xf32>
    %c0_20 = arith.constant 0 : index
    %c2_21 = arith.constant 2 : index
    %c0_22 = arith.constant 0 : index
    %c0_23 = arith.constant 0 : index
    %20 = vector.load %arg9[%c0_20, %c2_21, %c0_22, %c0_23] : memref<1x4x8x256xf32, #tpu.memory_space<vmem>>, vector<1x1x8x256xf32>
    %21 = vector.shape_cast %20 : vector<1x1x8x256xf32> to vector<8x256xf32>
    %22 = vector.broadcast %19 : vector<1x256xf32> to vector<8x256xf32>
    %23 = arith.mulf %22, %21 : vector<8x256xf32>
    %c0_24 = arith.constant 0 : index
    %c2_25 = arith.constant 2 : index
    %c0_26 = arith.constant 0 : index
    %c0_27 = arith.constant 0 : index
    %24 = vector.load %arg10[%c0_24, %c2_25, %c0_26, %c0_27] : memref<1x4x8x256xf32, #tpu.memory_space<vmem>>, vector<1x1x8x256xf32>
    %25 = vector.shape_cast %24 : vector<1x1x8x256xf32> to vector<8x256xf32>
    %26 = vector.shape_cast %23 : vector<8x256xf32> to vector<1x1x8x256xf32>
    tpu.vector_store %arg10[%c0_24, %c2_25, %c0_26, %c0_27], %26 {strides = array<i32>} : memref<1x4x8x256xf32, #tpu.memory_space<vmem>>, vector<1x1x8x256xf32>,
    %c3 = arith.constant 3 : index
    %c0_28 = arith.constant 0 : index
    %27 = vector.load %arg11[%c3, %c0_28] : memref<4x256xf32, #tpu.memory_space<vmem>>, vector<1x256xf32>
    %c0_29 = arith.constant 0 : index
    %c3_30 = arith.constant 3 : index
    %c0_31 = arith.constant 0 : index
    %c0_32 = arith.constant 0 : index
    %28 = vector.load %arg9[%c0_29, %c3_30, %c0_31, %c0_32] : memref<1x4x8x256xf32, #tpu.memory_space<vmem>>, vector<1x1x8x256xf32>
    %29 = vector.shape_cast %28 : vector<1x1x8x256xf32> to vector<8x256xf32>
    %30 = vector.broadcast %27 : vector<1x256xf32> to vector<8x256xf32>
    %31 = arith.mulf %30, %29 : vector<8x256xf32>
    %c0_33 = arith.constant 0 : index
    %c3_34 = arith.constant 3 : index
    %c0_35 = arith.constant 0 : index
    %c0_36 = arith.constant 0 : index
    %32 = vector.load %arg10[%c0_33, %c3_34, %c0_35, %c0_36] : memref<1x4x8x256xf32, #tpu.memory_space<vmem>>, vector<1x1x8x256xf32>
    %33 = vector.shape_cast %32 : vector<1x1x8x256xf32> to vector<8x256xf32>
    %34 = vector.shape_cast %31 : vector<8x256xf32> to vector<1x1x8x256xf32>
    tpu.vector_store %arg10[%c0_33, %c3_34, %c0_35, %c0_36], %34 {strides = array<i32>} : memref<1x4x8x256xf32, #tpu.memory_space<vmem>>, vector<1x1x8x256xf32>,
    return
  }
  func.func @transform_0(%arg0: i32, %arg1: i32, %arg2: i32) -> (i32, i32) {
    %c0_i32 = arith.constant 0 : i32
    %c0_i32_0 = arith.constant 0 : i32
    %c0_i32_1 = arith.constant 0 : i32
    return %c0_i32, %c0_i32_0 : i32, i32
  }
  func.func @transform_1(%arg0: i32, %arg1: i32, %arg2: i32) -> (i32, i32) {
    %c0_i32 = arith.constant 0 : i32
    %c0_i32_0 = arith.constant 0 : i32
    %c0_i32_1 = arith.constant 0 : i32
    return %c0_i32, %c0_i32_0 : i32, i32
  }
  func.func @transform_2(%arg0: i32, %arg1: i32, %arg2: i32) -> (i32, i32) {
    %c0_i32 = arith.constant 0 : i32
    %c0_i32_0 = arith.constant 0 : i32
    %c0_i32_1 = arith.constant 0 : i32
    return %c0_i32, %c0_i32_0 : i32, i32
  }
  func.func @transform_3(%arg0: i32, %arg1: i32, %arg2: i32) -> (i32, i32) {
    %c0_i32 = arith.constant 0 : i32
    %c0_i32_0 = arith.constant 0 : i32
    %c0_i32_1 = arith.constant 0 : i32
    return %c0_i32, %c0_i32_0 : i32, i32
  }
  func.func @transform_4(%arg0: i32, %arg1: i32, %arg2: i32) -> (i32, i32) {
    %c0_i32 = arith.constant 0 : i32
    %c0_i32_0 = arith.constant 0 : i32
    %c0_i32_1 = arith.constant 0 : i32
    return %c0_i32, %c0_i32_0 : i32, i32
  }
  func.func @transform_5(%arg0: i32, %arg1: i32, %arg2: i32) -> (i32, i32, i32) {
    %c0_i32 = arith.constant 0 : i32
    %c0_i32_0 = arith.constant 0 : i32
    return %arg0, %c0_i32, %arg1 : i32, i32, i32
  }
  func.func @transform_6(%arg0: i32, %arg1: i32, %arg2: i32) -> (i32, i32, i32, i32) {
    %c0_i32 = arith.constant 0 : i32
    %c0_i32_0 = arith.constant 0 : i32
    return %arg0, %c0_i32, %arg2, %arg1 : i32, i32, i32, i32
  }
  func.func @transform_7(%arg0: i32, %arg1: i32, %arg2: i32) -> (i32, i32, i32, i32) {
    %c0_i32 = arith.constant 0 : i32
    %c0_i32_0 = arith.constant 0 : i32
    return %arg0, %c0_i32, %arg2, %arg1 : i32, i32, i32, i32
  }
}

</mosaic_0001>

<bundles_post_ra>
// kernel: feature_att.1
= control target key start
LH: loop header
LB: loop body
LE: loop exit
PB: predicated region body
PF: predicated region fallthrough
CT: control target
= control target key end

     0   :  { %s1748_s24 = smov 0   ;;  %s1750_s25 = smov 0   ;;  %s1815_s0 = inlined_call_operand.vmem [shape: f32[4,8], index: 0, kind: input, shape index: {}]   ;;  %s1816_s1 = inlined_call_operand.vmem [shape: f32[4,1], index: 1, kind: input, shape index: {}]   ;;  %s1817_s2 = inlined_call_operand.vmem [shape: f32[4,1], index: 2, kind: input, shape index: {}]   ;;  %s1818_s3 = inlined_call_operand.vmem [shape: f32[4,4], index: 3, kind: input, shape index: {}]   ;;  %s1819_s4 = inlined_call_operand.vmem [shape: f32[4,1], index: 4, kind: input, shape index: {}]   ;;  %s1820_s5 = inlined_call_operand.vmem [shape: f32[2,8,256], index: 5, kind: input, shape index: {}]   ;;  %s1821_s6 = inlined_call_operand.vmem [shape: f32[2,4,8,256], index: 6, kind: input, shape index: {}]   ;;  %s1822_s7 = inlined_call_operand.vmem [shape: f32[2,4,8,256], index: 7, kind: output, shape index: {}]  }
   0x1   :  { %s1752_s26 = smov 0  }
   0x2 LB: > { %s36_s27 = sadd.s32 1, %s1700_s25  ;;  %p1598_p0 = scmp.ge.s32.totalorder %s1704_s26, 1  ;;  %s1704_s26 = sphi %s1752_s26, %s17_s26   ;;  %s1700_s25 = sphi %s1750_s25, %s1824_s25   ;;  %s1696_s24 = sphi %s1748_s24, %s1823_s24  }
   0x3   : > { %p38_p1 = scmp.ge.s32.totalorder %s36_s27, 2  ;;  %p290_p2 = scmp.lt.s32.totalorder %s1704_s26, 3 }
   0x5   : > { %s1826_s27 = smov (%p38_p1, %s36_s27), 0  ;;  %p291_p3 = pnand %p1598_p0, %p290_p2 }
   0x6   : > { %p348_p4 = scmp.lt.s32.totalorder (!%p291_p3), %s1696_s24, 1  ;;  %v391_v0 = vld [vmem:[%s1815_s0] sm:$0xf] (!%p291_p3)  ;;  %vm392_vm0 = vcmask (!%p291_p3), 64512   ;;  %v1706_v1 = vmov (!%p291_p3), 0.0   ;;  %v1707_v3 = vmov (!%p291_p3), 0  }
   0x7   : > { %294 = sbr.rel (%p291_p3) target bundleno = 586 (0x24a), region = 48  ;;  %462 = vmatprep.mubr.f32.mxu0 (!%p291_p3), %v1706_v1  ;;  %v394_v2 = vsel (!%p291_p3), %vm392_vm0, %v391_v0, 0  ;;  %1672 = vset.pattern.permute.xlu0 (!%p291_p3), %v1707_v3  ;;  %v861_v4 = vld [vmem:[%s1816_s1] sm:$0xf] (!%p291_p3)  ;;  %vm890_vm1 = vcmask (!%p291_p3), 31744   ;;  %vm894_vm3 = vcmask (!%p291_p3), 1043456  }
   0x8   : > { %v463_v5 = vand.u32 (!%p291_p3), 4294901760, %v394_v2  ;;  %864 = vperm.xlu0 (!%p291_p3), %1672, %v861_v4   ;;  %967 = vmatprep.mubr.f32.mxu1 (!%p291_p3), %v1706_v1  ;;  %v869_v6 = vld [vmem:[%s1817_s2] sm:$0xf] (!%p291_p3)  ;;  %v1387_v4 = vlaneseq (!%p291_p3) }
   0x9   : > { %1673 = vset.pattern.permute.xlu1 (!%p291_p3), %v1707_v3  ;;  %v884_v23 = vld [vmem:[%s1819_s4] sm:$0xf] (!%p291_p3) }
   0xa   : > { %v464_v7 = vsub.f32 (!%p291_p3), %v394_v2, %v463_v5  ;;  %887 = vperm.xlu1 (!%p291_p3), %1673, %v884_v23   ;;  %v883_v24 = vld [vmem:[%s1818_s3] sm:$0xf] (!%p291_p3) }
   0xb   : > { %v892_v25 = vsel (!%p291_p3), %vm890_vm1, %v883_v24, 0 }
   0xc   : > { %v465_v9 = vand.u32 (!%p291_p3), 4294901760, %v464_v7  ;;  %872 = vperm.xlu0 (!%p291_p3), %1672, %v869_v6   ;;  %v968_v26 = vand.u32 (!%p291_p3), 4294901760, %v892_v25  ;;  %v1388_v6 = vshrl.u32 (!%p291_p3), %v1387_v4, 7 }
   0xe   : > { %s1828_s24 = smov (!%p348_p4, %s1696_s24), 1  ;;  %v466_v11 = vsub.f32 %v464_v7, %v465_v9  ;;  %v969_v28 = vsub.f32 %v892_v25, %v968_v26 }
   0xf   : > { %s1621_s11 = sshll.u32 %s1828_s24, 4  ;;  %s1622_s19 = sshll.u32 %s1828_s24, 6 }
  0x10   : > { %s355_s14 = scalar_lea.vmem %s1820_s5, %s1621_s11  ;;  %v467_v15 = vand.u32 4294901760, %v466_v11  ;;  %v970_v34 = vand.u32 4294901760, %v969_v28  ;;  %s369_s22 = scalar_lea.vmem %s1821_s6, %s1622_s19 }
  0x11   : > { %v390_v8 = vld [vmem:[%s355_s14 + $0x8] sm:$0xff]  ;;  %v389_v12 = vld [vmem:[%s355_s14] sm:$0xff]  ;;  %v1607_v11 = vld [vmem:[%s369_s22 + $0x10] sm:$0xff]  ;;  %s383_s28 = scalar_lea.vmem %s1822_s7, %s1622_s19 }
  0x12   : > { %v396_v10 = vand.u32 4294901760, %v390_v8  ;;  %v398_v14 = vand.u32 4294901760, %v389_v12  ;;  %v971_v39 = vsub.f32 %v969_v28, %v970_v34 }
  0x14   : > { %397 = vmatprep.subr.mxu0 %v396_v10  ;;  %v475_v13 = vsub.f32 %v390_v8, %v396_v10  ;;  %v481_v17 = vsub.f32 %v389_v12, %v398_v14  ;;  %v972_v46 = vand.u32 4294901760, %v971_v39  ;;  %v1393_v8 = vsub.s32 1, %v1388_v6  ;;  %v1608_v12 = vld [vmem:[%s369_s22 + $0x18] sm:$0xff] }
  0x15   : > { %399 = vmatpush1.msra.mxu0 %v398_v14 }
  0x16   : > { %v476_v16 = vand.u32 4294901760, %v475_v13  ;;  %468 = vmatmul.mubr.f32.vlgmr.msra.gmra.mrb[0].mxu0 %v467_v15  ;;  %v482_v19 = vand.u32 4294901760, %v481_v17  ;;  %v1615_v15 = vld [vmem:[%s369_s22 + $0x30] sm:$0xff] }
  0x17   : > { %548 = vmatprep.mubr.f32.mxu0 %v1706_v1 }
  0x18   : > { %v477_v18 = vsub.f32 %v475_v13, %v476_v16  ;;  %v483_v21 = vsub.f32 %v481_v17, %v482_v19 }
  0x1a   : > { %v478_v20 = vand.u32 4294901760, %v477_v18  ;;  %v484_v22 = vand.u32 4294901760, %v483_v21 }
  0x1c   : > { %479 = vmatprep.subr.mxu0 %v478_v20 }
  0x1d   : > { %485 = vmatpush1.msra.mxu0 %v484_v22 }
  0x1e   : > { %550 = vmatmul.mubr.f32.vlgmr.msra.gmra.mrb[0].mxu0 %v463_v5  ;;  %558 = vmatprep.subr.mxu0 %v475_v13  ;;  %v1611_v13 = vld [vmem:[%s369_s22 + $0x20] sm:$0xff] }
  0x1f   : > { %561 = vmatpush1.msra.mxu0 %v481_v17  ;;  %624 = vmatprep.mubr.f32.mxu0 %v1706_v1 }
  0x20   : > { %634 = vmatprep.subr.mxu0 %v396_v10 }
  0x26   : > { %627 = vmatmul.mubr.f32.vlgmr.msra.gmra.mrb[0].mxu0 %v464_v7  ;;  %v1389_v7 = vsub.s32 0, %v1388_v6 }
  0x27   : > { %636 = vmatpush1.msra.mxu0 %v398_v14  ;;  %699 = vmatprep.mubr.f32.mxu0 %v1706_v1 }
  0x28   : > { %712 = vmatprep.subr.mxu0 %v476_v16  ;;  %v1616_v16 = vld [vmem:[%s369_s22 + $0x38] sm:$0xff] }
  0x2e   : > { %703 = vmatmul.mubr.f32.vlgmr.msra.gmra.mrb[0].mxu0 %v465_v9  ;;  %v1384_v9 = vld [vmem:[%s369_s22] sm:$0xff] }
  0x2f   : > { %716 = vmatpush1.msra.mxu0 %v482_v19  ;;  %779 = vmatprep.mubr.f32.mxu0 %v1706_v1 }
  0x30   : > { %788 = vmatprep.subr.mxu0 %v396_v10  ;;  %v1385_v10 = vld [vmem:[%s369_s22 + $0x8] sm:$0xff] }
  0x36   : > { %781 = vmatmul.mubr.f32.vlgmr.msra.gmra.mrb[0].mxu0 %v463_v5 }
  0x37   : > { %790 = vmatpush1.msra.mxu0 %v398_v14  ;;  %853 = vmatprep.mubr.f32.mxu0 %v1706_v1  ;;  %v1612_v14 = vld [vmem:[%s369_s22 + $0x28] sm:$0xff] }
  0x3e   : > { %855 = vmatmul.mubr.f32.vlgmr.msra.gmra.mrb[0].mxu0 %v463_v5 }
  0x87   : > { %v865_v27 = vpop.permute.xlu0 %864 }
  0x89   : > { %v888_v55 = vpop.permute.xlu1 %887 }
  0x8b   : > { %v873_v32 = vpop.permute.xlu0 %872 }
 0x111   : > { %v856_v29 = vpop.f32.mrb[0].mxu0 }
 0x112   : > { %v867_v30 = vmul.f32 %v865_v27, %v856_v29  ;;  %v858_v31 = vpop.f32.mrb[1].mxu0 }
 0x113   : > { %v868_v33 = vmul.f32 %v865_v27, %v858_v31 }
 0x114   : > { %v875_v35 = vadd.f32 %v873_v32, %v867_v30 }
 0x115   : > { %v876_v36 = vadd.f32 %v873_v32, %v868_v33 }
 0x116   : > { %vm877_vm2 = vcmp.gt.f32.partialorder %v875_v35, 0.0  ;;  %v879_v37 = vmul.f32 0.01, %v875_v35 }
 0x117   : > { %vm878_vm4 = vcmp.gt.f32.partialorder %v876_v36, 0.0  ;;  %v880_v38 = vmul.f32 0.01, %v876_v36 }
 0x118   : > { %v881_v40 = vsel %vm877_vm2, %v875_v35, %v879_v37 }
 0x119   : > { %v896_v41 = vsel %vm894_vm3, %v881_v40, 0  ;;  %v882_v42 = vsel %vm878_vm4, %v876_v36, %v880_v38 }
 0x11a   : > { %v899_v43 = vsel %vm894_vm3, %v882_v42, 0  ;;  %v903_v44 = vand.u32 4294901760, %v896_v41 }
 0x11b   : > { %v901_v45 = vand.u32 4294901760, %v899_v43 }
 0x11c   : > { %v986_v47 = vsub.f32 %v896_v41, %v903_v44 }
 0x11d   : > { %902 = vmatprep.subr.mxu1 %v901_v45  ;;  %v980_v48 = vsub.f32 %v899_v43, %v901_v45 }
 0x11e   : > { %904 = vmatpush1.msra.mxu1 %v903_v44  ;;  %v987_v49 = vand.u32 4294901760, %v986_v47 }
 0x11f   : > { %973 = vmatmul.mubr.f32.vlgmr.msra.gmra.mrb[0].mxu1 %v972_v46  ;;  %v981_v50 = vand.u32 4294901760, %v980_v48 }
 0x120   : > { %v988_v51 = vsub.f32 %v986_v47, %v987_v49  ;;  %1053 = vmatprep.mubr.f32.mxu1 %v1706_v1 }
 0x121   : > { %v982_v52 = vsub.f32 %v980_v48, %v981_v50 }
 0x122   : > { %v989_v54 = vand.u32 4294901760, %v988_v51 }
 0x123   : > { %v983_v53 = vand.u32 4294901760, %v982_v52 }
 0x125   : > { %984 = vmatprep.subr.mxu1 %v983_v53 }
 0x126   : > { %990 = vmatpush1.msra.mxu1 %v989_v54 }
 0x127   : > { %1055 = vmatmul.mubr.f32.vlgmr.msra.gmra.mrb[0].mxu1 %v968_v26  ;;  %1063 = vmatprep.subr.mxu1 %v980_v48 }
 0x128   : > { %1066 = vmatpush1.msra.mxu1 %v986_v47  ;;  %1129 = vmatprep.mubr.f32.mxu1 %v1706_v1 }
 0x129   : > { %1139 = vmatprep.subr.mxu1 %v901_v45 }
 0x12f   : > { %1132 = vmatmul.mubr.f32.vlgmr.msra.gmra.mrb[0].mxu1 %v969_v28 }
 0x130   : > { %1141 = vmatpush1.msra.mxu1 %v903_v44  ;;  %1204 = vmatprep.mubr.f32.mxu1 %v1706_v1 }
 0x131   : > { %1217 = vmatprep.subr.mxu1 %v981_v50 }
 0x137   : > { %1208 = vmatmul.mubr.f32.vlgmr.msra.gmra.mrb[0].mxu1 %v970_v34 }
 0x138   : > { %1221 = vmatpush1.msra.mxu1 %v987_v49  ;;  %1284 = vmatprep.mubr.f32.mxu1 %v1706_v1 }
 0x139   : > { %1293 = vmatprep.subr.mxu1 %v901_v45 }
 0x13f   : > { %1286 = vmatmul.mubr.f32.vlgmr.msra.gmra.mrb[0].mxu1 %v968_v26 }
 0x140   : > { %1295 = vmatpush1.msra.mxu1 %v903_v44  ;;  %1358 = vmatprep.mubr.f32.mxu1 %v1706_v1 }
 0x147   : > { %1360 = vmatmul.mubr.f32.vlgmr.msra.gmra.mrb[0].mxu1 %v968_v26 }
 0x21a   : > { %v1361_v56 = vpop.f32.mrb[0].mxu1 }
 0x21b   : > { %v1624_v57 = vadd.f32 %v1361_v56, %v888_v55  ;;  %v1363_v58 = vpop.f32.mrb[1].mxu1 }
 0x21c   : > { %v1625_v59 = vadd.f32 %v1363_v58, %v888_v55 }
 0x21d   : > { %v1605_v60 = vmul.f32 -1.442695, %v1624_v57 }
 0x21e   : > { %v1606_v61 = vmul.f32 -1.442695, %v1625_v59 }
 0x21f   : > { %1674 = vpow2.f32 %v1605_v60 }
 0x220   : > { %1676 = vpow2.f32 %v1606_v61 }
 0x229   : > { %v1675_v62 = vpop.eup %1674 }
 0x22a   : > { %v1677_v63 = vpop.eup %1676  ;;  %v1372_v0 = vadd.f32 1.0, %v1675_v62 }
 0x22b   : > { %v1373_v2 = vadd.f32 1.0, %v1677_v63 }
 0x22c   : > { %1678 = vrcp.f32 %v1372_v0 }
 0x22d   : > { %1680 = vrcp.f32 %v1373_v2 }
 0x236   : > { %v1679_v3 = vpop.eup %1678 }
 0x237   : > { %v1681_v1 = vpop.eup %1680 }
 0x238   : > { %v1380_v5 = vcombine.low %v1679_v3, %v1681_v1 }
 0x23a   : > { %1382 = vst [vmem:[#allocation2] sm:$0xff] %v1380_v5 }
 0x241   : > { %v1383_v17 = vld [vmem:[#allocation2] ss:$4 sm:$0x3]  ;;  %v1402_v18 = vld [vmem:[#allocation2 + $0x1] ss:$4 sm:$0x3] }
 0x242   : > { %v1390_v19 = vrot.slane %v1383_v17, %v1389_v7  ;;  %v1394_v20 = vrot.slane %v1383_v17, %v1393_v8  ;;  %v1410_v21 = vrot.slane %v1402_v18, %v1389_v7  ;;  %v1414_v22 = vrot.slane %v1402_v18, %v1393_v8  ;;  %v1423_v23 = vld [vmem:[#allocation2 + $0x2] ss:$4 sm:$0x3]  ;;  %v1444_v24 = vld [vmem:[#allocation2 + $0x3] ss:$4 sm:$0x3] }
 0x243   : > { %v1431_v25 = vrot.slane %v1423_v23, %v1389_v7  ;;  %v1435_v26 = vrot.slane %v1423_v23, %v1393_v8  ;;  %v1452_v27 = vrot.slane %v1444_v24, %v1389_v7  ;;  %v1456_v28 = vrot.slane %v1444_v24, %v1393_v8 }
 0x244   : > { %v1397_v29 = vmul.f32 %v1390_v19, %v1384_v9  ;;  %v1398_v30 = vmul.f32 %v1394_v20, %v1385_v10  ;;  %v1417_v31 = vmul.f32 %v1607_v11, %v1410_v21  ;;  %v1418_v32 = vmul.f32 %v1608_v12, %v1414_v22 }
 0x245   : > { %v1438_v33 = vmul.f32 %v1611_v13, %v1431_v25  ;;  %v1439_v34 = vmul.f32 %v1612_v14, %v1435_v26  ;;  %v1459_v35 = vmul.f32 %v1615_v15, %v1452_v27  ;;  %v1460_v36 = vmul.f32 %v1616_v16, %v1456_v28 }
 0x246   : > { %1399 = vst [vmem:[%s383_s28] sm:$0xff] %v1397_v29  ;;  %1400 = vst [vmem:[%s383_s28 + $0x8] sm:$0xff] %v1398_v30 }
 0x247   : > { %1609 = vst [vmem:[%s383_s28 + $0x10] sm:$0xff] %v1417_v31  ;;  %1610 = vst [vmem:[%s383_s28 + $0x18] sm:$0xff] %v1418_v32 }
 0x248   : > { %1613 = vst [vmem:[%s383_s28 + $0x20] sm:$0xff] %v1438_v33  ;;  %1614 = vst [vmem:[%s383_s28 + $0x28] sm:$0xff] %v1439_v34 }
 0x249   : > { %1617 = vst [vmem:[%s383_s28 + $0x30] sm:$0xff] %v1459_v35  ;;  %1618 = vst [vmem:[%s383_s28 + $0x38] sm:$0xff] %v1460_v36 }
 0x24a PF: > { %s17_s26 = sadd.s32 1, %s1704_s26   ;;  %s1823_s24 = smov %s1700_s25 }
 0x24b   : > { %p14_p5 = scmp.ge.s32.totalorder %s17_s26, 4   ;;  %s1824_s25 = smov %s1826_s27 }
 0x24d   :  { %16 = sbr.rel (!%p14_p5) target bundleno = 2 (0x2), region = 94 }

</bundles_post_ra>
